<compile_context>
chip_gen: v5e
topology: v5e:2x2
jax: 0.10.0
libtpu: 0.0.40
codegen_flags: <defaults>
</compile_context>

<pallas_src>
import jax
import jax.numpy as jnp
from jax.experimental import pallas as pl
from jax.experimental.pallas import tpu as pltpu


def _round_up(x: int, m: int) -> int:
    return ((x + m - 1) // m) * m


def _mlp_kernel(x_ref, w1_ref, b1_ref, w2_ref, b2_ref, o_ref):
    # x_ref:  (TB, F)  activation tile (pipelined along the batch grid axis)
    # w1_ref: (F, H)   hidden weights  (VMEM-resident, constant index map)
    # b1_ref: (1, H)   hidden bias     (f32)
    # w2_ref: (H, O)   output weights  (VMEM-resident)
    # b2_ref: (1, O)   output bias     (f32)
    # o_ref:  (TB, O)  output tile
    # Layer 1: MXU matmul with f32 accumulation; bias-add + ReLU on the VPU.
    h = jnp.dot(x_ref[...], w1_ref[...], preferred_element_type=jnp.float32)
    h = jnp.maximum(h + b1_ref[...], 0.0)
    # Layer 2: cast activations back to the operand dtype for the MXU,
    # accumulate in f32, add bias in f32.
    out = jnp.dot(h.astype(w2_ref.dtype), w2_ref[...],
                  preferred_element_type=jnp.float32) + b2_ref[...]
    o_ref[...] = out.astype(o_ref.dtype)


def net_forward(x, w1, b1, w2, b2, *, tile_b=None, compute_dtype=jnp.float32):
    """Forward pass of Net.

    x:  (B, F)
    w1: (F, H), b1: (H,)   -- hidden Linear (weights stored as (in, out))
    w2: (H, O), b2: (O,)   -- output Linear
    compute_dtype: jnp.float32 for exact toy checks, jnp.bfloat16 for
                   production sizes (MXU-native; f32 accumulation kept).
    returns (B, O) float32
    """
    B, F = x.shape
    H = w1.shape[1]
    O = w2.shape[1]

    # Batch tiling (the only tiled dim).  Small batches -> one grid step;
    # large batches -> 512-row tiles.
    if tile_b is None:
        tile_b = min(_round_up(B, 8), 512)
    B_pad = _round_up(B, tile_b)

    x_c = x.astype(compute_dtype)
    if B_pad != B:
        x_c = jnp.pad(x_c, ((0, B_pad - B), (0, 0)))  # batch-only padding
    w1_c = w1.astype(compute_dtype)
    w2_c = w2.astype(compute_dtype)
    b1_2d = b1.astype(jnp.float32).reshape(1, H)  # biases stay f32
    b2_2d = b2.astype(jnp.float32).reshape(1, O)

    grid = (B_pad // tile_b,)

    # Cost estimate from the true (unpadded) problem sizes.
    itemsize = jnp.dtype(compute_dtype).itemsize
    flops = 2 * B * (F * H + H * O)
    bytes_accessed = ((B * F + F * H + H * O) * itemsize
                      + (H + O) * 4 + B * O * 4)

    # VMEM budget: resident weights/biases + pipelined x/o tiles (x2 for
    # double buffering of the streamed tiles; weights counted x2 as the
    # conservative case in which Buffered(1) is unavailable).
    resident_bytes = (F * H + H * O) * itemsize + (H + O) * 4
    tile_bytes = tile_b * (F * itemsize + O * 4)
    vmem_needed = 2 * (resident_bytes + tile_bytes)
    vmem_limit = None
    if vmem_needed > 12 * 1024 * 1024:  # beyond safe headroom of v5e's 16 MiB default
        vmem_limit = int(min(vmem_needed * 1.5, 100 * 1024 * 1024))

    def build_call(single_buffer_weights: bool):
        if single_buffer_weights:
            # Constant index maps need no double-buffering: halve resident VMEM.
            def const_spec(shape):
                return pl.BlockSpec(shape, lambda i: (0, 0),
                                    pipeline_mode=pl.Buffered(1))
        else:
            def const_spec(shape):
                return pl.BlockSpec(shape, lambda i: (0, 0))

        return pl.pallas_call(
            _mlp_kernel,
            out_shape=jax.ShapeDtypeStruct((B_pad, O), jnp.float32),
            grid=grid,
            in_specs=[
                pl.BlockSpec((tile_b, F), lambda i: (i, 0)),  # x: pipelined
                const_spec((F, H)),                           # W1: resident
                const_spec((1, H)),                           # b1: resident
                const_spec((H, O)),                           # W2: resident
                const_spec((1, O)),                           # b2: resident
            ],
            out_specs=pl.BlockSpec((tile_b, O), lambda i: (i, 0)),
            compiler_params=pltpu.CompilerParams(
                dimension_semantics=("parallel",),  # batch tiles shard across TCs on v7x
                vmem_limit_bytes=vmem_limit,
            ),
            cost_estimate=pl.CostEstimate(
                flops=flops, bytes_accessed=bytes_accessed, transcendentals=0),
        )

    args = (x_c, w1_c, b1_2d, w2_c, b2_2d)
    try:
        out_pad = build_call(True)(*args)
    except Exception:
        # Compatibility fallback: jax versions where pipeline_mode=pl.Buffered(1)
        # is not supported on a pallas_call BlockSpec.  Functionally identical,
        # just double-buffers the (tiny) resident weights.
        out_pad = build_call(False)(*args)

    return out_pad[:B] if B_pad != B else out_pad


if __name__ == "__main__":
    # Shapes implied by the script: n_feature=2 (x is (N, 2)), binary head.
    n_feature, n_hidden, n_output = 2, 32, 2
    batch = 16

    key = jax.random.PRNGKey(0)
    k_x0, k_x1, k_w1, k_b1, k_w2, k_b2 = jax.random.split(key, 6)

    # Mirror the data construction: two Gaussian blobs around +2 and -2.
    x0 = 2.0 + jax.random.normal(k_x0, (batch // 2, n_feature), dtype=jnp.float32)
    x1 = -2.0 + jax.random.normal(k_x1, (batch // 2, n_feature), dtype=jnp.float32)
    x = jnp.concatenate([x0, x1], axis=0)

    # Deterministic parameter init (PyTorch Linear weight is (out, in);
    # stored transposed as (in, out) here).
    w1 = 0.1 * jax.random.normal(k_w1, (n_feature, n_hidden), dtype=jnp.float32)
    b1 = 0.1 * jax.random.normal(k_b1, (n_hidden,), dtype=jnp.float32)
    w2 = 0.1 * jax.random.normal(k_w2, (n_hidden, n_output), dtype=jnp.float32)
    b2 = 0.1 * jax.random.normal(k_b2, (n_output,), dtype=jnp.float32)

    # Pure-JAX reference.
    ref = jnp.maximum(x @ w1 + b1, 0.0) @ w2 + b2

    # f32 path (exact-ish check at toy sizes).
    out = jax.block_until_ready(net_forward(x, w1, b1, w2, b2))
    assert out.shape == (batch, n_output)
    assert jnp.allclose(out, ref, atol=1e-5, rtol=1e-5), "f32 mismatch vs reference"

    # bf16 operand path (production configuration), loose tolerance.
    out_bf16 = jax.block_until_ready(
        net_forward(x, w1, b1, w2, b2, compute_dtype=jnp.bfloat16))
    assert out_bf16.shape == (batch, n_output)
    assert jnp.allclose(out_bf16, ref, atol=1e-1, rtol=5e-2), "bf16 mismatch vs reference"

    print("KERNEL_OK")
</pallas_src>

<mosaic_0001>
module attributes {stable_mosaic.version = 11 : i64} {
  func.func @_mlp_kernel(%arg0: i32, %arg1: memref<16x2xf32, #tpu.memory_space<vmem>>, %arg2: memref<2x32xf32, #tpu.memory_space<vmem>>, %arg3: memref<1x32xf32, #tpu.memory_space<vmem>>, %arg4: memref<32x2xf32, #tpu.memory_space<vmem>>, %arg5: memref<1x2xf32, #tpu.memory_space<vmem>>, %arg6: memref<16x2xf32, #tpu.memory_space<vmem>>) attributes {dimension_semantics = [#tpu.dimension_semantics<parallel>], iteration_bounds = array<i64: 1>, scalar_prefetch = 0 : i64, scratch_operands = 0 : i64, tpu.core_type = #tpu.core_type<tc>, window_params = [{transform_indices = @transform_0, window_bounds = array<i64: 16, 2>}, {pipeline_mode = #tpu.pipeline_mode<synchronous>, transform_indices = @transform_1, window_bounds = array<i64: 2, 32>}, {pipeline_mode = #tpu.pipeline_mode<synchronous>, transform_indices = @transform_2, window_bounds = array<i64: 1, 32>}, {pipeline_mode = #tpu.pipeline_mode<synchronous>, transform_indices = @transform_3, window_bounds = array<i64: 32, 2>}, {pipeline_mode = #tpu.pipeline_mode<synchronous>, transform_indices = @transform_4, window_bounds = array<i64: 1, 2>}, {transform_indices = @transform_5, window_bounds = array<i64: 16, 2>}]} {
    %c0 = arith.constant 0 : index
    %c0_0 = arith.constant 0 : index
    %0 = vector.load %arg1[%c0, %c0_0] : memref<16x2xf32, #tpu.memory_space<vmem>>, vector<16x2xf32>
    %c0_1 = arith.constant 0 : index
    %c0_2 = arith.constant 0 : index
    %1 = vector.load %arg2[%c0_1, %c0_2] : memref<2x32xf32, #tpu.memory_space<vmem>>, vector<2x32xf32>
    %cst = arith.constant dense<0.000000e+00> : vector<16x32xf32>
    %2 = tpu.matmul %0, %1, %cst {dimension_numbers = #tpu.dot_dimension_numbers<[1], [0], [0], [1], [0, 0, 1, 1], [], []>} : vector<16x2xf32>, vector<2x32xf32>, vector<16x32xf32> -> vector<16x32xf32>
    %c0_3 = arith.constant 0 : index
    %c0_4 = arith.constant 0 : index
    %3 = vector.load %arg3[%c0_3, %c0_4] : memref<1x32xf32, #tpu.memory_space<vmem>>, vector<1x32xf32>
    %4 = vector.broadcast %3 : vector<1x32xf32> to vector<16x32xf32>
    %5 = arith.addf %2, %4 : vector<16x32xf32>
    %cst_5 = arith.constant 0.000000e+00 : f32
    %6 = vector.broadcast %cst_5 : f32 to vector<16x32xf32>
    %7 = arith.maximumf %5, %6 : vector<16x32xf32>
    %c0_6 = arith.constant 0 : index
    %c0_7 = arith.constant 0 : index
    %8 = vector.load %arg4[%c0_6, %c0_7] : memref<32x2xf32, #tpu.memory_space<vmem>>, vector<32x2xf32>
    %cst_8 = arith.constant dense<0.000000e+00> : vector<16x2xf32>
    %9 = tpu.matmul %7, %8, %cst_8 {dimension_numbers = #tpu.dot_dimension_numbers<[1], [0], [0], [1], [0, 0, 1, 1], [], []>} : vector<16x32xf32>, vector<32x2xf32>, vector<16x2xf32> -> vector<16x2xf32>
    %c0_9 = arith.constant 0 : index
    %c0_10 = arith.constant 0 : index
    %10 = vector.load %arg5[%c0_9, %c0_10] : memref<1x2xf32, #tpu.memory_space<vmem>>, vector<1x2xf32>
    %11 = vector.broadcast %10 : vector<1x2xf32> to vector<16x2xf32>
    %12 = arith.addf %9, %11 : vector<16x2xf32>
    %c0_11 = arith.constant 0 : index
    %c0_12 = arith.constant 0 : index
    %13 = vector.load %arg6[%c0_11, %c0_12] : memref<16x2xf32, #tpu.memory_space<vmem>>, vector<16x2xf32>
    tpu.vector_store %arg6[%c0_11, %c0_12], %12 {strides = array<i32>} : memref<16x2xf32, #tpu.memory_space<vmem>>, vector<16x2xf32>,
    return
  }
  func.func @transform_0(%arg0: i32) -> (i32, i32) {
    %c0_i32 = arith.constant 0 : i32
    %c0_i32_0 = arith.constant 0 : i32
    return %arg0, %c0_i32 : i32, i32
  }
  func.func @transform_1(%arg0: i32) -> (i32, i32) {
    %c0_i32 = arith.constant 0 : i32
    %c0_i32_0 = arith.constant 0 : i32
    %c0_i32_1 = arith.constant 0 : i32
    return %c0_i32, %c0_i32_0 : i32, i32
  }
  func.func @transform_2(%arg0: i32) -> (i32, i32) {
    %c0_i32 = arith.constant 0 : i32
    %c0_i32_0 = arith.constant 0 : i32
    %c0_i32_1 = arith.constant 0 : i32
    return %c0_i32, %c0_i32_0 : i32, i32
  }
  func.func @transform_3(%arg0: i32) -> (i32, i32) {
    %c0_i32 = arith.constant 0 : i32
    %c0_i32_0 = arith.constant 0 : i32
    %c0_i32_1 = arith.constant 0 : i32
    return %c0_i32, %c0_i32_0 : i32, i32
  }
  func.func @transform_4(%arg0: i32) -> (i32, i32) {
    %c0_i32 = arith.constant 0 : i32
    %c0_i32_0 = arith.constant 0 : i32
    %c0_i32_1 = arith.constant 0 : i32
    return %c0_i32, %c0_i32_0 : i32, i32
  }
  func.func @transform_5(%arg0: i32) -> (i32, i32) {
    %c0_i32 = arith.constant 0 : i32
    %c0_i32_0 = arith.constant 0 : i32
    return %arg0, %c0_i32 : i32, i32
  }
}

module attributes {stable_mosaic.version = 11 : i64} {
  func.func @_mlp_kernel(%arg0: i32, %arg1: memref<16x2xf32, #tpu.memory_space<vmem>>, %arg2: memref<2x32xf32, #tpu.memory_space<vmem>>, %arg3: memref<1x32xf32, #tpu.memory_space<vmem>>, %arg4: memref<32x2xf32, #tpu.memory_space<vmem>>, %arg5: memref<1x2xf32, #tpu.memory_space<vmem>>, %arg6: memref<16x2xf32, #tpu.memory_space<vmem>>) attributes {dimension_semantics = [#tpu.dimension_semantics<parallel>], iteration_bounds = array<i64: 1>, scalar_prefetch = 0 : i64, scratch_operands = 0 : i64, tpu.core_type = #tpu.core_type<tc>, window_params = [{transform_indices = @transform_0, window_bounds = array<i64: 16, 2>}, {pipeline_mode = #tpu.pipeline_mode<synchronous>, transform_indices = @transform_1, window_bounds = array<i64: 2, 32>}, {pipeline_mode = #tpu.pipeline_mode<synchronous>, transform_indices = @transform_2, window_bounds = array<i64: 1, 32>}, {pipeline_mode = #tpu.pipeline_mode<synchronous>, transform_indices = @transform_3, window_bounds = array<i64: 32, 2>}, {pipeline_mode = #tpu.pipeline_mode<synchronous>, transform_indices = @transform_4, window_bounds = array<i64: 1, 2>}, {transform_indices = @transform_5, window_bounds = array<i64: 16, 2>}]} {
    %c0 = arith.constant 0 : index
    %c0_0 = arith.constant 0 : index
    %0 = vector.load %arg1[%c0, %c0_0] : memref<16x2xf32, #tpu.memory_space<vmem>>, vector<16x2xf32>
    %c0_1 = arith.constant 0 : index
    %c0_2 = arith.constant 0 : index
    %1 = vector.load %arg2[%c0_1, %c0_2] : memref<2x32xf32, #tpu.memory_space<vmem>>, vector<2x32xf32>
    %cst = arith.constant dense<0.000000e+00> : vector<16x32xf32>
    %2 = tpu.matmul %0, %1, %cst {dimension_numbers = #tpu.dot_dimension_numbers<[1], [0], [0], [1], [0, 0, 1, 1], [], []>} : vector<16x2xf32>, vector<2x32xf32>, vector<16x32xf32> -> vector<16x32xf32>
    %c0_3 = arith.constant 0 : index
    %c0_4 = arith.constant 0 : index
    %3 = vector.load %arg3[%c0_3, %c0_4] : memref<1x32xf32, #tpu.memory_space<vmem>>, vector<1x32xf32>
    %4 = vector.broadcast %3 : vector<1x32xf32> to vector<16x32xf32>
    %5 = arith.addf %2, %4 : vector<16x32xf32>
    %cst_5 = arith.constant 0.000000e+00 : f32
    %6 = vector.broadcast %cst_5 : f32 to vector<16x32xf32>
    %7 = arith.maximumf %5, %6 : vector<16x32xf32>
    %c0_6 = arith.constant 0 : index
    %c0_7 = arith.constant 0 : index
    %8 = vector.load %arg4[%c0_6, %c0_7] : memref<32x2xf32, #tpu.memory_space<vmem>>, vector<32x2xf32>
    %cst_8 = arith.constant dense<0.000000e+00> : vector<16x2xf32>
    %9 = tpu.matmul %7, %8, %cst_8 {dimension_numbers = #tpu.dot_dimension_numbers<[1], [0], [0], [1], [0, 0, 1, 1], [], []>} : vector<16x32xf32>, vector<32x2xf32>, vector<16x2xf32> -> vector<16x2xf32>
    %c0_9 = arith.constant 0 : index
    %c0_10 = arith.constant 0 : index
    %10 = vector.load %arg5[%c0_9, %c0_10] : memref<1x2xf32, #tpu.memory_space<vmem>>, vector<1x2xf32>
    %11 = vector.broadcast %10 : vector<1x2xf32> to vector<16x2xf32>
    %12 = arith.addf %9, %11 : vector<16x2xf32>
    %c0_11 = arith.constant 0 : index
    %c0_12 = arith.constant 0 : index
    %13 = vector.load %arg6[%c0_11, %c0_12] : memref<16x2xf32, #tpu.memory_space<vmem>>, vector<16x2xf32>
    tpu.vector_store %arg6[%c0_11, %c0_12], %12 {strides = array<i32>} : memref<16x2xf32, #tpu.memory_space<vmem>>, vector<16x2xf32>,
    return
  }
  func.func @transform_0(%arg0: i32) -> (i32, i32) {
    %c0_i32 = arith.constant 0 : i32
    %c0_i32_0 = arith.constant 0 : i32
    return %arg0, %c0_i32 : i32, i32
  }
  func.func @transform_1(%arg0: i32) -> (i32, i32) {
    %c0_i32 = arith.constant 0 : i32
    %c0_i32_0 = arith.constant 0 : i32
    %c0_i32_1 = arith.constant 0 : i32
    return %c0_i32, %c0_i32_0 : i32, i32
  }
  func.func @transform_2(%arg0: i32) -> (i32, i32) {
    %c0_i32 = arith.constant 0 : i32
    %c0_i32_0 = arith.constant 0 : i32
    %c0_i32_1 = arith.constant 0 : i32
    return %c0_i32, %c0_i32_0 : i32, i32
  }
  func.func @transform_3(%arg0: i32) -> (i32, i32) {
    %c0_i32 = arith.constant 0 : i32
    %c0_i32_0 = arith.constant 0 : i32
    %c0_i32_1 = arith.constant 0 : i32
    return %c0_i32, %c0_i32_0 : i32, i32
  }
  func.func @transform_4(%arg0: i32) -> (i32, i32) {
    %c0_i32 = arith.constant 0 : i32
    %c0_i32_0 = arith.constant 0 : i32
    %c0_i32_1 = arith.constant 0 : i32
    return %c0_i32, %c0_i32_0 : i32, i32
  }
  func.func @transform_5(%arg0: i32) -> (i32, i32) {
    %c0_i32 = arith.constant 0 : i32
    %c0_i32_0 = arith.constant 0 : i32
    return %arg0, %c0_i32 : i32, i32
  }
}

</mosaic_0001>

<bundles_post_ra>
// kernel: tpu_custom_call.1
= control target key start
LH: loop header
LB: loop body
LE: loop exit
PB: predicated region body
PF: predicated region fallthrough
CT: control target
= control target key end

     0   :  { %vm34_vm0 = vcmask 1041408   ;;  %vm27_vm1 = vcmask 15360   ;;  %vm71_vm2 = vcmask 261120   ;;  %s186_s1 = inlined_call_operand.vmem [shape: f32[2,32], index: 1, kind: input, shape index: {}]   ;;  %s187_s0 = inlined_call_operand.vmem [shape: f32[16,2], index: 0, kind: input, shape index: {}]   ;;  %s188_s3 = inlined_call_operand.vmem [shape: f32[32,2], index: 3, kind: input, shape index: {}]   ;;  %s189_s2 = inlined_call_operand.vmem [shape: f32[1,32], index: 2, kind: input, shape index: {}]   ;;  %s190_s4 = inlined_call_operand.vmem [shape: f32[1,2], index: 4, kind: input, shape index: {}]   ;;  %s191_s5 = inlined_call_operand.vmem [shape: f32[16,2], index: 5, kind: output, shape index: {}]  }
   0x1   :  { %v22_v0 = vld [vmem:[%s186_s1] sm:$0x3]  ;;  %v21_v1 = vld [vmem:[%s187_s0 + $0x8] sm:$0xff]  ;;  %v66_v3 = vld [vmem:[%s188_s3 + $0x18] sm:$0xff] }
   0x2   :  { %v20_v2 = vld [vmem:[%s187_s0] sm:$0xff]  ;;  %112 = vmatpush.msk.msra.mxu3 %vm34_vm0, %v22_v0  ;;  %107 = vmatpush.msk.msra.mxu0 %vm34_vm0, %v22_v0  ;;  %v65_v4 = vld [vmem:[%s188_s3 + $0x10] sm:$0xff]  ;;  %v64_v5 = vld [vmem:[%s188_s3 + $0x8] sm:$0xff] }
   0x3   :  { %109 = vmatmul.msk.f32.vlgmr.msra.gmra.mxu3 %vm27_vm1, %v21_v1  ;;  %108 = vmatmul.msk.f32.vlgmr.msra.gmra.mxu0 %vm27_vm1, %v20_v2  ;;  %v63_v6 = vld [vmem:[%s188_s3] sm:$0xff] }
   0x4   :  { %113 = vmatpush.msra.mxu2 %v66_v3  ;;  %90 = vmatpush.msra.mxu1 %v66_v3  ;;  %v117_v7 = vld [vmem:[%s189_s2] ss:$0 sm:$0xff] }
   0x5   :  { %v118_v14 = vld [vmem:[%s190_s4] ss:$0 sm:$0xff] }
   0x6   :  { %114 = vmatpush.msra.mxu2 %v65_v4  ;;  %91 = vmatpush.msra.mxu1 %v65_v4 }
   0x8   :  { %115 = vmatpush.msra.mxu2 %v64_v5  ;;  %92 = vmatpush.msra.mxu1 %v64_v5 }
   0xa   :  { %116 = vmatpush.msra.mxu2 %v63_v6  ;;  %93 = vmatpush.msra.mxu1 %v63_v6 }
  0x80   :  { %v55_v8 = vpop.f32.mrf.mxu0 }
  0x81   :  { %v56_v9 = vadd.f32 %v117_v7, %v55_v8 }
  0x83   :  { %v61_v10 = vmax.f32 %v56_v9, 0.0 }
  0x85   :  { %110 = vmatmul.msk.f32.vlgmr.msra.gmra.mxu1 %vm71_vm2, %v61_v10 }
  0x86   :  { %v58_v11 = vpop.f32.mrf.mxu3 }
  0x87   :  { %v59_v12 = vadd.f32 %v117_v7, %v58_v11 }
  0x89   :  { %v62_v13 = vmax.f32 %v59_v12, 0.0 }
  0x8b   :  { %111 = vmatmul.msk.f32.vlgmr.msra.gmra.mxu2 %vm71_vm2, %v62_v13 }
 0x102   :  { %v95_v15 = vpop.f32.mrf.mxu1 }
 0x103   :  { %v96_v16 = vadd.f32 %v118_v14, %v95_v15 }
 0x105   :  { %101 = vst.msk [vmem:[%s191_s5] sm:$0xff] %vm27_vm1, %v96_v16 }
 0x10e   :  { %v98_v17 = vpop.f32.mrf.mxu2 }
 0x10f   :  { %v99_v18 = vadd.f32 %v118_v14, %v98_v17 }
 0x111   :  { %102 = vst.msk [vmem:[%s191_s5 + $0x8] sm:$0xff] %vm27_vm1, %v99_v18 }

// kernel: tpu_custom_call.1
= control target key start
LH: loop header
LB: loop body
LE: loop exit
PB: predicated region body
PF: predicated region fallthrough
CT: control target
= control target key end

     0   :  { %vm34_vm0 = vcmask 1041408   ;;  %vm27_vm1 = vcmask 15360   ;;  %vm71_vm2 = vcmask 261120   ;;  %s186_s1 = inlined_call_operand.vmem [shape: f32[2,32], index: 1, kind: input, shape index: {}]   ;;  %s187_s0 = inlined_call_operand.vmem [shape: f32[16,2], index: 0, kind: input, shape index: {}]   ;;  %s188_s3 = inlined_call_operand.vmem [shape: f32[32,2], index: 3, kind: input, shape index: {}]   ;;  %s189_s2 = inlined_call_operand.vmem [shape: f32[1,32], index: 2, kind: input, shape index: {}]   ;;  %s190_s4 = inlined_call_operand.vmem [shape: f32[1,2], index: 4, kind: input, shape index: {}]   ;;  %s191_s5 = inlined_call_operand.vmem [shape: f32[16,2], index: 5, kind: output, shape index: {}]  }
   0x1   :  { %v22_v0 = vld [vmem:[%s186_s1] sm:$0x3]  ;;  %v21_v1 = vld [vmem:[%s187_s0 + $0x8] sm:$0xff]  ;;  %v66_v3 = vld [vmem:[%s188_s3 + $0x18] sm:$0xff] }
   0x2   :  { %v20_v2 = vld [vmem:[%s187_s0] sm:$0xff]  ;;  %112 = vmatpush.msk.msra.mxu3 %vm34_vm0, %v22_v0  ;;  %107 = vmatpush.msk.msra.mxu0 %vm34_vm0, %v22_v0  ;;  %v65_v4 = vld [vmem:[%s188_s3 + $0x10] sm:$0xff]  ;;  %v64_v5 = vld [vmem:[%s188_s3 + $0x8] sm:$0xff] }
   0x3   :  { %109 = vmatmul.msk.f32.vlgmr.msra.gmra.mxu3 %vm27_vm1, %v21_v1  ;;  %108 = vmatmul.msk.f32.vlgmr.msra.gmra.mxu0 %vm27_vm1, %v20_v2  ;;  %v63_v6 = vld [vmem:[%s188_s3] sm:$0xff] }
   0x4   :  { %113 = vmatpush.msra.mxu2 %v66_v3  ;;  %90 = vmatpush.msra.mxu1 %v66_v3  ;;  %v117_v7 = vld [vmem:[%s189_s2] ss:$0 sm:$0xff] }
   0x5   :  { %v118_v14 = vld [vmem:[%s190_s4] ss:$0 sm:$0xff] }
   0x6   :  { %114 = vmatpush.msra.mxu2 %v65_v4  ;;  %91 = vmatpush.msra.mxu1 %v65_v4 }
   0x8   :  { %115 = vmatpush.msra.mxu2 %v64_v5  ;;  %92 = vmatpush.msra.mxu1 %v64_v5 }
   0xa   :  { %116 = vmatpush.msra.mxu2 %v63_v6  ;;  %93 = vmatpush.msra.mxu1 %v63_v6 }
  0x80   :  { %v55_v8 = vpop.f32.mrf.mxu0 }
  0x81   :  { %v56_v9 = vadd.f32 %v117_v7, %v55_v8 }
  0x83   :  { %v61_v10 = vmax.f32 %v56_v9, 0.0 }
  0x85   :  { %110 = vmatmul.msk.f32.vlgmr.msra.gmra.mxu1 %vm71_vm2, %v61_v10 }
  0x86   :  { %v58_v11 = vpop.f32.mrf.mxu3 }
  0x87   :  { %v59_v12 = vadd.f32 %v117_v7, %v58_v11 }
  0x89   :  { %v62_v13 = vmax.f32 %v59_v12, 0.0 }
  0x8b   :  { %111 = vmatmul.msk.f32.vlgmr.msra.gmra.mxu2 %vm71_vm2, %v62_v13 }
 0x102   :  { %v95_v15 = vpop.f32.mrf.mxu1 }
 0x103   :  { %v96_v16 = vadd.f32 %v118_v14, %v95_v15 }
 0x105   :  { %101 = vst.msk [vmem:[%s191_s5] sm:$0xff] %vm27_vm1, %v96_v16 }
 0x10e   :  { %v98_v17 = vpop.f32.mrf.mxu2 }
 0x10f   :  { %v99_v18 = vadd.f32 %v118_v14, %v98_v17 }
 0x111   :  { %102 = vst.msk [vmem:[%s191_s5 + $0x8] sm:$0xff] %vm27_vm1, %v99_v18 }

</bundles_post_ra>
